<compile_context>
chip_gen: v5e
topology: v5e:2x2
jax: 0.10.0
libtpu: 0.0.40
codegen_flags: <defaults>
</compile_context>

<pallas_src>
import functools

import jax
import jax.numpy as jnp
from jax.experimental import pallas as pl
from jax.experimental.pallas import tpu as pltpu

_LANE = 128


def _round_up(x, m):
    return ((x + m - 1) // m) * m


def _round_down(x, m):
    return (x // m) * m


def _vmem_capacity_bytes():
    """Per-core VMEM capacity; conservative (v7x-safe) fallback."""
    try:
        info = pltpu.get_tpu_info()
        cap = int(getattr(info, "vmem_capacity_bytes", 0) or 0)
        if cap > 0:
            return cap
    except Exception:
        pass
    return 64 * 1024 * 1024


def _fwd_kernel(x_ref, wbig_ref, bbig_ref, smat_ref, wclsm_ref, wclsv_ref,
                bcls_ref, out_ref, acc_ref, *, hidden_size):
    """Grid = (batch tiles, K tiles over D*L).  Accumulate the fused
    block-diagonal encoder matmul across K; at the last K step apply bias+ReLU,
    single-pass per-lead mean/var, and the classification head."""
    k = pl.program_id(1)

    @pl.when(k == 0)
    def _init():
        acc_ref[...] = jnp.zeros_like(acc_ref)

    acc_ref[...] += jnp.dot(x_ref[...], wbig_ref[...],
                            preferred_element_type=jnp.float32)

    @pl.when(k == pl.num_programs(1) - 1)
    def _finalize():
        enc = jnp.maximum(acc_ref[...] + bbig_ref[...], 0.0)        # [TB, L*H] f32
        tb = enc.shape[0]
        # Per-lead sum and sum-of-squares in ONE MXU push: stack enc and enc^2
        # along the sublane (batch) axis and multiply by the 0/1 block-sum matrix.
        stacked = jnp.concatenate([enc, enc * enc], axis=0)          # [2*TB, L*H]
        both = jnp.dot(stacked, smat_ref[...],
                       preferred_element_type=jnp.float32)           # [2*TB, L]
        s, ss = both[:tb], both[tb:]
        h = jnp.float32(hidden_size)
        mean = s / h
        # unbiased variance (ddof=1): sum((e-m)^2) = ss - s*mean; clamp >= 0
        # against f32 cancellation.  H == 1 yields inf/nan, matching torch.var.
        var = jnp.maximum(ss - s * mean, 0.0) / (h - 1.0)
        # classification head, split to avoid a narrow-lane concat:
        #   logits = [mean, var] @ W_cls + b = mean @ W_m + var @ W_v + b
        logits = (jnp.dot(mean, wclsm_ref[...], preferred_element_type=jnp.float32)
                  + jnp.dot(var, wclsv_ref[...], preferred_element_type=jnp.float32)
                  + bcls_ref[...])
        out_ref[...] = logits.astype(out_ref.dtype)


def prepare_weights(w_enc, b_enc, w_cls, b_cls, *, compute_dtype=jnp.bfloat16):
    """Hoisted per-weight-set preparation (call once, reuse across forwards).

    w_enc : [L, D, H]  per-lead encoder weights, pre-transposed ([in, out])
    b_enc : [L, H]
    w_cls : [2L, C]    classification weight, pre-transposed ([in, out])
    b_cls : [C]
    """
    L, D, H = w_enc.shape
    C = w_cls.shape[-1]
    DL, LH = D * L, L * H
    x_bytes = jnp.dtype(compute_dtype).itemsize

    # Block-diagonal encoder weight, row-permuted to match x's native [B, D, L]
    # layout flattened as [B, D*L] (d-major, lead-minor):
    #   W_big[d*L + l, l*H + h] = w_enc[l, d, h]
    eye = jnp.eye(L, dtype=jnp.float32)
    w_big = jnp.einsum('ldh,lk->dlkh', w_enc.astype(jnp.float32), eye)
    w_big = w_big.reshape(DL, LH).astype(compute_dtype)
    b_big = b_enc.reshape(1, LH).astype(jnp.float32)

    # 0/1 block-sum matrix: column l sums the H hidden units of lead l
    s_mat = jnp.repeat(jnp.eye(L, dtype=jnp.float32), H, axis=0)     # [L*H, L]

    # lane-dense (128-padded) classification head, split into mean/var halves
    c_pad = _round_up(max(C, 1), _LANE)
    w_cls_p = jnp.zeros((2 * L, c_pad), jnp.float32).at[:, :C].set(
        w_cls.astype(jnp.float32))
    b_cls_p = jnp.zeros((1, c_pad), jnp.float32).at[:, :C].set(
        b_cls.astype(jnp.float32))

    # K-tiling decision over the D*L contraction so w_big (~L^2*D*H bytes) never
    # dominates VMEM on v7x; single K step when the whole weight fits comfortably.
    budget = int(0.65 * _vmem_capacity_bytes())
    tk = DL if DL * LH * x_bytes <= budget // 3 else 512
    dl_pad = _round_up(DL, tk)
    if dl_pad != DL:
        w_big = jnp.pad(w_big, ((0, dl_pad - DL), (0, 0)))

    return dict(
        w_big=w_big, b_big=b_big, s_mat=s_mat,
        w_cls_m=w_cls_p[:L], w_cls_v=w_cls_p[L:], b_cls=b_cls_p,
        L=L, D=D, H=H, C=C, DL=DL, LH=LH, dl_pad=dl_pad, tk=tk,
        c_pad=c_pad, compute_dtype=compute_dtype)


def autoencoder_multiclass_forward(x_bdl, prepared, *, block_b=512):
    """Forward pass.  x_bdl: [B, input_size, num_leads] (native PyTorch layout)."""
    B, D, L = x_bdl.shape
    assert D == prepared["D"] and L == prepared["L"], "shape mismatch vs weights"
    H, C = prepared["H"], prepared["C"]
    DL, LH = prepared["DL"], prepared["LH"]
    dl_pad, tk, c_pad = prepared["dl_pad"], prepared["tk"], prepared["c_pad"]
    compute_dtype = prepared["compute_dtype"]
    nk = dl_pad // tk

    x_bytes = jnp.dtype(compute_dtype).itemsize
    row_align = 16 if x_bytes < 4 else 8       # bf16 packs 2 rows per sublane

    cap = _vmem_capacity_bytes()
    budget = int(0.65 * cap)                   # tile-sizing budget (gen-specific)
    vmem_limit = int(0.75 * cap)               # scoped limit with physical headroom

    def vmem_estimate(tb, single_buffer):
        f32b = 4
        io = 2 * tb * tk * x_bytes + 2 * tb * c_pad * f32b      # pipelined x / out
        wbig_bufs = 2 if nk > 1 else (1 if single_buffer else 2)
        inv_bufs = 1 if single_buffer else 2
        weights = (wbig_bufs * tk * LH * x_bytes
                   + inv_bufs * (LH * f32b + LH * L * f32b
                                 + 2 * L * c_pad * f32b + c_pad * f32b))
        scratch = tb * LH * f32b
        temps = 3 * tb * LH * f32b + 4 * tb * L * f32b + 2 * tb * c_pad * f32b
        return io + weights + scratch + temps

    def pick_tb(single_buffer):
        tb = min(block_b, _round_up(B, row_align))
        if B > row_align:
            # force >= 2 batch grid steps so both v7x TensorCores get work
            tb = min(tb, _round_up((B + 1) // 2, row_align))
        tb = max(row_align, _round_down(tb, row_align))
        while tb > row_align and vmem_estimate(tb, single_buffer) > budget:
            tb = max(row_align, _round_down(tb // 2, row_align))
        return tb

    x_flat = x_bdl.reshape(B, DL).astype(compute_dtype)   # free reshape, no transpose

    def run(single_buffer):
        tb = pick_tb(single_buffer)
        b_pad = _round_up(B, tb)
        xin = x_flat
        if b_pad != B or dl_pad != DL:
            xin = jnp.pad(xin, ((0, b_pad - B), (0, dl_pad - DL)))
        grid = (b_pad // tb, nk)

        def spec(shape, index_map, invariant):
            # single-buffer grid-invariant operands (halves their VMEM footprint)
            if single_buffer and invariant and hasattr(pl, "Buffered"):
                try:
                    return pl.BlockSpec(shape, index_map,
                                        pipeline_mode=pl.Buffered(1))
                except TypeError:
                    pass
            return pl.BlockSpec(shape, index_map)

        kernel = functools.partial(_fwd_kernel, hidden_size=H)
        return pl.pallas_call(
            kernel,
            out_shape=jax.ShapeDtypeStruct((b_pad, c_pad), jnp.float32),
            grid=grid,
            in_specs=[
                pl.BlockSpec((tb, tk), lambda i, k: (i, k)),              # x tile
                spec((tk, LH), lambda i, k: (k, 0), invariant=(nk == 1)),  # W_big
                spec((1, LH), lambda i, k: (0, 0), True),                 # b_big
                spec((LH, L), lambda i, k: (0, 0), True),                 # block-sum
                spec((L, c_pad), lambda i, k: (0, 0), True),              # cls (mean)
                spec((L, c_pad), lambda i, k: (0, 0), True),              # cls (var)
                spec((1, c_pad), lambda i, k: (0, 0), True),              # cls bias
            ],
            out_specs=pl.BlockSpec((tb, c_pad), lambda i, k: (i, 0)),
            scratch_shapes=[pltpu.VMEM((tb, LH), jnp.float32)],
            compiler_params=pltpu.CompilerParams(
                dimension_semantics=("parallel", "arbitrary"),
                vmem_limit_bytes=int(vmem_limit)),
        )(xin, prepared["w_big"], prepared["b_big"], prepared["s_mat"],
          prepared["w_cls_m"], prepared["w_cls_v"], prepared["b_cls"])

    try:
        out = run(True)
    except Exception:
        # fall back to default (double) buffering if Buffered(1) is unsupported
        out = run(False)

    return out[:B, :C]


def _reference(x_bdl, w_enc, b_enc, w_cls, b_cls):
    """Pure-JAX reference matching the PyTorch forward."""
    B, D, L = x_bdl.shape
    means, variances = [], []
    for l in range(L):
        enc = jnp.maximum(x_bdl[:, :, l] @ w_enc[l] + b_enc[l][None, :], 0.0)
        means.append(jnp.mean(enc, axis=1, keepdims=True))
        variances.append(jnp.var(enc, axis=1, ddof=1, keepdims=True))
    feat = jnp.concatenate(means + variances, axis=1)
    return feat @ w_cls + b_cls[None, :]


if __name__ == "__main__":
    # small shapes consistent with the module (num_leads must equal hidden_size
    # for the PyTorch forward to be well-formed)
    batch = 32
    input_size = 32
    hidden_size = 8
    num_leads = 8
    num_classes = 6

    key = jax.random.PRNGKey(0)
    k_x, k_we, k_be, k_wc, k_bc = jax.random.split(key, 5)

    x = jax.random.normal(k_x, (batch, input_size, num_leads), jnp.float32)
    w_enc = 0.1 * jax.random.normal(
        k_we, (num_leads, input_size, hidden_size), jnp.float32)
    b_enc = 0.1 * jax.random.normal(k_be, (num_leads, hidden_size), jnp.float32)
    w_cls = 0.1 * jax.random.normal(
        k_wc, (2 * num_leads, num_classes), jnp.float32)
    b_cls = 0.1 * jax.random.normal(k_bc, (num_classes,), jnp.float32)

    ref = _reference(x, w_enc, b_enc, w_cls, b_cls)

    # f32 path: tight check against the pure-JAX reference (small block_b -> 4 grid steps)
    prep_f32 = prepare_weights(w_enc, b_enc, w_cls, b_cls, compute_dtype=jnp.float32)
    out_f32 = jax.block_until_ready(
        autoencoder_multiclass_forward(x, prep_f32, block_b=8))
    assert out_f32.shape == (batch, num_classes)
    assert jnp.allclose(out_f32, ref, atol=2e-3, rtol=2e-3), "f32 mismatch vs reference"

    # bf16 matmul path (default perf config): loose tolerance for input rounding
    prep_bf16 = prepare_weights(w_enc, b_enc, w_cls, b_cls, compute_dtype=jnp.bfloat16)
    out_bf16 = jax.block_until_ready(
        autoencoder_multiclass_forward(x, prep_bf16))
    assert out_bf16.shape == (batch, num_classes)
    assert jnp.allclose(out_bf16, ref, atol=5e-2, rtol=5e-2), "bf16 mismatch vs reference"

    print("KERNEL_OK")
</pallas_src>

<mosaic_0001>
module attributes {stable_mosaic.version = 11 : i64} {
  func.func @_fwd_kernel(%arg0: i32, %arg1: i32, %arg2: memref<8x256xf32, #tpu.memory_space<vmem>>, %arg3: memref<256x64xf32, #tpu.memory_space<vmem>>, %arg4: memref<1x64xf32, #tpu.memory_space<vmem>>, %arg5: memref<64x8xf32, #tpu.memory_space<vmem>>, %arg6: memref<8x128xf32, #tpu.memory_space<vmem>>, %arg7: memref<8x128xf32, #tpu.memory_space<vmem>>, %arg8: memref<1x128xf32, #tpu.memory_space<vmem>>, %arg9: memref<8x128xf32, #tpu.memory_space<vmem>>, %arg10: memref<8x64xf32, #tpu.memory_space<vmem>>) attributes {dimension_semantics = [#tpu.dimension_semantics<parallel>, #tpu.dimension_semantics<arbitrary>], iteration_bounds = array<i64: 4, 1>, scalar_prefetch = 0 : i64, scratch_operands = 1 : i64, tpu.core_type = #tpu.core_type<tc>, window_params = [{transform_indices = @transform_0, window_bounds = array<i64: 8, 256>}, {pipeline_mode = #tpu.pipeline_mode<synchronous>, transform_indices = @transform_1, window_bounds = array<i64: 256, 64>}, {pipeline_mode = #tpu.pipeline_mode<synchronous>, transform_indices = @transform_2, window_bounds = array<i64: 1, 64>}, {pipeline_mode = #tpu.pipeline_mode<synchronous>, transform_indices = @transform_3, window_bounds = array<i64: 64, 8>}, {pipeline_mode = #tpu.pipeline_mode<synchronous>, transform_indices = @transform_4, window_bounds = array<i64: 8, 128>}, {pipeline_mode = #tpu.pipeline_mode<synchronous>, transform_indices = @transform_5, window_bounds = array<i64: 8, 128>}, {pipeline_mode = #tpu.pipeline_mode<synchronous>, transform_indices = @transform_6, window_bounds = array<i64: 1, 128>}, {transform_indices = @transform_7, window_bounds = array<i64: 8, 128>}]} {
    %c0_i32 = arith.constant 0 : i32
    %0 = arith.cmpi eq, %arg1, %c0_i32 : i32
    %1 = arith.extui %0 : i1 to i32
    %c0_i32_0 = arith.constant 0 : i32
    %2 = arith.cmpi ne, %1, %c0_i32_0 : i32
    scf.if %2 {
      %cst_10 = arith.constant 0.000000e+00 : f32
      %12 = vector.broadcast %cst_10 : f32 to vector<8x64xf32>
      %c0_11 = arith.constant 0 : index
      %c0_12 = arith.constant 0 : index
      %13 = vector.load %arg10[%c0_11, %c0_12] : memref<8x64xf32, #tpu.memory_space<vmem>>, vector<8x64xf32>
      tpu.vector_store %arg10[%c0_11, %c0_12], %12 {strides = array<i32>} : memref<8x64xf32, #tpu.memory_space<vmem>>, vector<8x64xf32>,
    } else {
    }
    %c0 = arith.constant 0 : index
    %c0_1 = arith.constant 0 : index
    %3 = vector.load %arg10[%c0, %c0_1] : memref<8x64xf32, #tpu.memory_space<vmem>>, vector<8x64xf32>
    %c0_2 = arith.constant 0 : index
    %c0_3 = arith.constant 0 : index
    %4 = vector.load %arg2[%c0_2, %c0_3] : memref<8x256xf32, #tpu.memory_space<vmem>>, vector<8x256xf32>
    %c0_4 = arith.constant 0 : index
    %c0_5 = arith.constant 0 : index
    %5 = vector.load %arg3[%c0_4, %c0_5] : memref<256x64xf32, #tpu.memory_space<vmem>>, vector<256x64xf32>
    %cst = arith.constant dense<0.000000e+00> : vector<8x64xf32>
    %6 = tpu.matmul %4, %5, %cst {dimension_numbers = #tpu.dot_dimension_numbers<[1], [0], [0], [1], [0, 0, 1, 1], [], []>} : vector<8x256xf32>, vector<256x64xf32>, vector<8x64xf32> -> vector<8x64xf32>
    %7 = arith.addf %3, %6 : vector<8x64xf32>
    %c0_6 = arith.constant 0 : index
    %c0_7 = arith.constant 0 : index
    %8 = vector.load %arg10[%c0_6, %c0_7] : memref<8x64xf32, #tpu.memory_space<vmem>>, vector<8x64xf32>
    tpu.vector_store %arg10[%c0_6, %c0_7], %7 {strides = array<i32>} : memref<8x64xf32, #tpu.memory_space<vmem>>, vector<8x64xf32>,
    %c0_i32_8 = arith.constant 0 : i32
    %9 = arith.cmpi eq, %arg1, %c0_i32_8 : i32
    %10 = arith.extui %9 : i1 to i32
    %c0_i32_9 = arith.constant 0 : i32
    %11 = arith.cmpi ne, %10, %c0_i32_9 : i32
    scf.if %11 {
      %c0_10 = arith.constant 0 : index
      %c0_11 = arith.constant 0 : index
      %12 = vector.load %arg10[%c0_10, %c0_11] : memref<8x64xf32, #tpu.memory_space<vmem>>, vector<8x64xf32>
      %c0_12 = arith.constant 0 : index
      %c0_13 = arith.constant 0 : index
      %13 = vector.load %arg4[%c0_12, %c0_13] : memref<1x64xf32, #tpu.memory_space<vmem>>, vector<1x64xf32>
      %14 = vector.broadcast %13 : vector<1x64xf32> to vector<8x64xf32>
      %15 = arith.addf %12, %14 : vector<8x64xf32>
      %cst_14 = arith.constant 0.000000e+00 : f32
      %16 = vector.broadcast %cst_14 : f32 to vector<8x64xf32>
      %17 = arith.maximumf %15, %16 : vector<8x64xf32>
      %18 = arith.mulf %17, %17 : vector<8x64xf32>
      %19 = tpu.concatenate %17, %18 in 0 : vector<8x64xf32>, vector<8x64xf32> -> vector<16x64xf32>
      %c0_15 = arith.constant 0 : index
      %c0_16 = arith.constant 0 : index
      %20 = vector.load %arg5[%c0_15, %c0_16] : memref<64x8xf32, #tpu.memory_space<vmem>>, vector<64x8xf32>
      %cst_17 = arith.constant dense<0.000000e+00> : vector<16x8xf32>
      %21 = tpu.matmul %19, %20, %cst_17 {dimension_numbers = #tpu.dot_dimension_numbers<[1], [0], [0], [1], [0, 0, 1, 1], [], []>} : vector<16x64xf32>, vector<64x8xf32>, vector<16x8xf32> -> vector<16x8xf32>
      %22 = vector.extract_strided_slice %21 {offsets = [0, 0], sizes = [8, 8], strides = [1, 1]} : vector<16x8xf32> to vector<8x8xf32>
      %23 = vector.extract_strided_slice %21 {offsets = [8, 0], sizes = [8, 8], strides = [1, 1]} : vector<16x8xf32> to vector<8x8xf32>
      %cst_18 = arith.constant 8.000000e+00 : f32
      %24 = vector.broadcast %cst_18 : f32 to vector<8x8xf32>
      %25 = arith.divf %22, %24 : vector<8x8xf32>
      %26 = arith.mulf %22, %25 : vector<8x8xf32>
      %27 = arith.subf %23, %26 : vector<8x8xf32>
      %cst_19 = arith.constant 0.000000e+00 : f32
      %28 = vector.broadcast %cst_19 : f32 to vector<8x8xf32>
      %29 = arith.maximumf %27, %28 : vector<8x8xf32>
      %cst_20 = arith.constant 8.000000e+00 : f32
      %cst_21 = arith.constant 1.000000e+00 : f32
      %30 = arith.subf %cst_20, %cst_21 : f32
      %31 = vector.broadcast %30 : f32 to vector<8x8xf32>
      %32 = arith.divf %29, %31 : vector<8x8xf32>
      %c0_22 = arith.constant 0 : index
      %c0_23 = arith.constant 0 : index
      %33 = vector.load %arg6[%c0_22, %c0_23] : memref<8x128xf32, #tpu.memory_space<vmem>>, vector<8x128xf32>
      %cst_24 = arith.constant dense<0.000000e+00> : vector<8x128xf32>
      %34 = tpu.matmul %25, %33, %cst_24 {dimension_numbers = #tpu.dot_dimension_numbers<[1], [0], [0], [1], [0, 0, 1, 1], [], []>} : vector<8x8xf32>, vector<8x128xf32>, vector<8x128xf32> -> vector<8x128xf32>
      %c0_25 = arith.constant 0 : index
      %c0_26 = arith.constant 0 : index
      %35 = vector.load %arg7[%c0_25, %c0_26] : memref<8x128xf32, #tpu.memory_space<vmem>>, vector<8x128xf32>
      %cst_27 = arith.constant dense<0.000000e+00> : vector<8x128xf32>
      %36 = tpu.matmul %32, %35, %cst_27 {dimension_numbers = #tpu.dot_dimension_numbers<[1], [0], [0], [1], [0, 0, 1, 1], [], []>} : vector<8x8xf32>, vector<8x128xf32>, vector<8x128xf32> -> vector<8x128xf32>
      %37 = arith.addf %34, %36 : vector<8x128xf32>
      %c0_28 = arith.constant 0 : index
      %c0_29 = arith.constant 0 : index
      %38 = vector.load %arg8[%c0_28, %c0_29] : memref<1x128xf32, #tpu.memory_space<vmem>>, vector<1x128xf32>
      %39 = vector.broadcast %38 : vector<1x128xf32> to vector<8x128xf32>
      %40 = arith.addf %37, %39 : vector<8x128xf32>
      %c0_30 = arith.constant 0 : index
      %c0_31 = arith.constant 0 : index
      %41 = vector.load %arg9[%c0_30, %c0_31] : memref<8x128xf32, #tpu.memory_space<vmem>>, vector<8x128xf32>
      tpu.vector_store %arg9[%c0_30, %c0_31], %40 {strides = array<i32>} : memref<8x128xf32, #tpu.memory_space<vmem>>, vector<8x128xf32>,
    } else {
    }
    return
  }
  func.func @transform_0(%arg0: i32, %arg1: i32) -> (i32, i32) {
    %c0_i32 = arith.constant 0 : i32
    return %arg0, %arg1 : i32, i32
  }
  func.func @transform_1(%arg0: i32, %arg1: i32) -> (i32, i32) {
    %c0_i32 = arith.constant 0 : i32
    %c0_i32_0 = arith.constant 0 : i32
    return %arg1, %c0_i32 : i32, i32
  }
  func.func @transform_2(%arg0: i32, %arg1: i32) -> (i32, i32) {
    %c0_i32 = arith.constant 0 : i32
    %c0_i32_0 = arith.constant 0 : i32
    %c0_i32_1 = arith.constant 0 : i32
    return %c0_i32, %c0_i32_0 : i32, i32
  }
  func.func @transform_3(%arg0: i32, %arg1: i32) -> (i32, i32) {
    %c0_i32 = arith.constant 0 : i32
    %c0_i32_0 = arith.constant 0 : i32
    %c0_i32_1 = arith.constant 0 : i32
    return %c0_i32, %c0_i32_0 : i32, i32
  }
  func.func @transform_4(%arg0: i32, %arg1: i32) -> (i32, i32) {
    %c0_i32 = arith.constant 0 : i32
    %c0_i32_0 = arith.constant 0 : i32
    %c0_i32_1 = arith.constant 0 : i32
    return %c0_i32, %c0_i32_0 : i32, i32
  }
  func.func @transform_5(%arg0: i32, %arg1: i32) -> (i32, i32) {
    %c0_i32 = arith.constant 0 : i32
    %c0_i32_0 = arith.constant 0 : i32
    %c0_i32_1 = arith.constant 0 : i32
    return %c0_i32, %c0_i32_0 : i32, i32
  }
  func.func @transform_6(%arg0: i32, %arg1: i32) -> (i32, i32) {
    %c0_i32 = arith.constant 0 : i32
    %c0_i32_0 = arith.constant 0 : i32
    %c0_i32_1 = arith.constant 0 : i32
    return %c0_i32, %c0_i32_0 : i32, i32
  }
  func.func @transform_7(%arg0: i32, %arg1: i32) -> (i32, i32) {
    %c0_i32 = arith.constant 0 : i32
    %c0_i32_0 = arith.constant 0 : i32
    return %arg0, %c0_i32 : i32, i32
  }
}

module attributes {stable_mosaic.version = 11 : i64} {
  func.func @_fwd_kernel(%arg0: i32, %arg1: i32, %arg2: memref<8x256xf32, #tpu.memory_space<vmem>>, %arg3: memref<256x64xf32, #tpu.memory_space<vmem>>, %arg4: memref<1x64xf32, #tpu.memory_space<vmem>>, %arg5: memref<64x8xf32, #tpu.memory_space<vmem>>, %arg6: memref<8x128xf32, #tpu.memory_space<vmem>>, %arg7: memref<8x128xf32, #tpu.memory_space<vmem>>, %arg8: memref<1x128xf32, #tpu.memory_space<vmem>>, %arg9: memref<8x128xf32, #tpu.memory_space<vmem>>, %arg10: memref<8x64xf32, #tpu.memory_space<vmem>>) attributes {dimension_semantics = [#tpu.dimension_semantics<parallel>, #tpu.dimension_semantics<arbitrary>], iteration_bounds = array<i64: 4, 1>, scalar_prefetch = 0 : i64, scratch_operands = 1 : i64, tpu.core_type = #tpu.core_type<tc>, window_params = [{transform_indices = @transform_0, window_bounds = array<i64: 8, 256>}, {transform_indices = @transform_1, window_bounds = array<i64: 256, 64>}, {pipeline_mode = #tpu.pipeline_mode<synchronous>, transform_indices = @transform_2, window_bounds = array<i64: 1, 64>}, {pipeline_mode = #tpu.pipeline_mode<synchronous>, transform_indices = @transform_3, window_bounds = array<i64: 64, 8>}, {pipeline_mode = #tpu.pipeline_mode<synchronous>, transform_indices = @transform_4, window_bounds = array<i64: 8, 128>}, {pipeline_mode = #tpu.pipeline_mode<synchronous>, transform_indices = @transform_5, window_bounds = array<i64: 8, 128>}, {pipeline_mode = #tpu.pipeline_mode<synchronous>, transform_indices = @transform_6, window_bounds = array<i64: 1, 128>}, {transform_indices = @transform_7, window_bounds = array<i64: 8, 128>}]} {
    %c0_i32 = arith.constant 0 : i32
    %0 = arith.cmpi eq, %arg1, %c0_i32 : i32
    %1 = arith.extui %0 : i1 to i32
    %c0_i32_0 = arith.constant 0 : i32
    %2 = arith.cmpi ne, %1, %c0_i32_0 : i32
    scf.if %2 {
      %cst_10 = arith.constant 0.000000e+00 : f32
      %12 = vector.broadcast %cst_10 : f32 to vector<8x64xf32>
      %c0_11 = arith.constant 0 : index
      %c0_12 = arith.constant 0 : index
      %13 = vector.load %arg10[%c0_11, %c0_12] : memref<8x64xf32, #tpu.memory_space<vmem>>, vector<8x64xf32>
      tpu.vector_store %arg10[%c0_11, %c0_12], %12 {strides = array<i32>} : memref<8x64xf32, #tpu.memory_space<vmem>>, vector<8x64xf32>,
    } else {
    }
    %c0 = arith.constant 0 : index
    %c0_1 = arith.constant 0 : index
    %3 = vector.load %arg10[%c0, %c0_1] : memref<8x64xf32, #tpu.memory_space<vmem>>, vector<8x64xf32>
    %c0_2 = arith.constant 0 : index
    %c0_3 = arith.constant 0 : index
    %4 = vector.load %arg2[%c0_2, %c0_3] : memref<8x256xf32, #tpu.memory_space<vmem>>, vector<8x256xf32>
    %c0_4 = arith.constant 0 : index
    %c0_5 = arith.constant 0 : index
    %5 = vector.load %arg3[%c0_4, %c0_5] : memref<256x64xf32, #tpu.memory_space<vmem>>, vector<256x64xf32>
    %cst = arith.constant dense<0.000000e+00> : vector<8x64xf32>
    %6 = tpu.matmul %4, %5, %cst {dimension_numbers = #tpu.dot_dimension_numbers<[1], [0], [0], [1], [0, 0, 1, 1], [], []>} : vector<8x256xf32>, vector<256x64xf32>, vector<8x64xf32> -> vector<8x64xf32>
    %7 = arith.addf %3, %6 : vector<8x64xf32>
    %c0_6 = arith.constant 0 : index
    %c0_7 = arith.constant 0 : index
    %8 = vector.load %arg10[%c0_6, %c0_7] : memref<8x64xf32, #tpu.memory_space<vmem>>, vector<8x64xf32>
    tpu.vector_store %arg10[%c0_6, %c0_7], %7 {strides = array<i32>} : memref<8x64xf32, #tpu.memory_space<vmem>>, vector<8x64xf32>,
    %c0_i32_8 = arith.constant 0 : i32
    %9 = arith.cmpi eq, %arg1, %c0_i32_8 : i32
    %10 = arith.extui %9 : i1 to i32
    %c0_i32_9 = arith.constant 0 : i32
    %11 = arith.cmpi ne, %10, %c0_i32_9 : i32
    scf.if %11 {
      %c0_10 = arith.constant 0 : index
      %c0_11 = arith.constant 0 : index
      %12 = vector.load %arg10[%c0_10, %c0_11] : memref<8x64xf32, #tpu.memory_space<vmem>>, vector<8x64xf32>
      %c0_12 = arith.constant 0 : index
      %c0_13 = arith.constant 0 : index
      %13 = vector.load %arg4[%c0_12, %c0_13] : memref<1x64xf32, #tpu.memory_space<vmem>>, vector<1x64xf32>
      %14 = vector.broadcast %13 : vector<1x64xf32> to vector<8x64xf32>
      %15 = arith.addf %12, %14 : vector<8x64xf32>
      %cst_14 = arith.constant 0.000000e+00 : f32
      %16 = vector.broadcast %cst_14 : f32 to vector<8x64xf32>
      %17 = arith.maximumf %15, %16 : vector<8x64xf32>
      %18 = arith.mulf %17, %17 : vector<8x64xf32>
      %19 = tpu.concatenate %17, %18 in 0 : vector<8x64xf32>, vector<8x64xf32> -> vector<16x64xf32>
      %c0_15 = arith.constant 0 : index
      %c0_16 = arith.constant 0 : index
      %20 = vector.load %arg5[%c0_15, %c0_16] : memref<64x8xf32, #tpu.memory_space<vmem>>, vector<64x8xf32>
      %cst_17 = arith.constant dense<0.000000e+00> : vector<16x8xf32>
      %21 = tpu.matmul %19, %20, %cst_17 {dimension_numbers = #tpu.dot_dimension_numbers<[1], [0], [0], [1], [0, 0, 1, 1], [], []>} : vector<16x64xf32>, vector<64x8xf32>, vector<16x8xf32> -> vector<16x8xf32>
      %22 = vector.extract_strided_slice %21 {offsets = [0, 0], sizes = [8, 8], strides = [1, 1]} : vector<16x8xf32> to vector<8x8xf32>
      %23 = vector.extract_strided_slice %21 {offsets = [8, 0], sizes = [8, 8], strides = [1, 1]} : vector<16x8xf32> to vector<8x8xf32>
      %cst_18 = arith.constant 8.000000e+00 : f32
      %24 = vector.broadcast %cst_18 : f32 to vector<8x8xf32>
      %25 = arith.divf %22, %24 : vector<8x8xf32>
      %26 = arith.mulf %22, %25 : vector<8x8xf32>
      %27 = arith.subf %23, %26 : vector<8x8xf32>
      %cst_19 = arith.constant 0.000000e+00 : f32
      %28 = vector.broadcast %cst_19 : f32 to vector<8x8xf32>
      %29 = arith.maximumf %27, %28 : vector<8x8xf32>
      %cst_20 = arith.constant 8.000000e+00 : f32
      %cst_21 = arith.constant 1.000000e+00 : f32
      %30 = arith.subf %cst_20, %cst_21 : f32
      %31 = vector.broadcast %30 : f32 to vector<8x8xf32>
      %32 = arith.divf %29, %31 : vector<8x8xf32>
      %c0_22 = arith.constant 0 : index
      %c0_23 = arith.constant 0 : index
      %33 = vector.load %arg6[%c0_22, %c0_23] : memref<8x128xf32, #tpu.memory_space<vmem>>, vector<8x128xf32>
      %cst_24 = arith.constant dense<0.000000e+00> : vector<8x128xf32>
      %34 = tpu.matmul %25, %33, %cst_24 {dimension_numbers = #tpu.dot_dimension_numbers<[1], [0], [0], [1], [0, 0, 1, 1], [], []>} : vector<8x8xf32>, vector<8x128xf32>, vector<8x128xf32> -> vector<8x128xf32>
      %c0_25 = arith.constant 0 : index
      %c0_26 = arith.constant 0 : index
      %35 = vector.load %arg7[%c0_25, %c0_26] : memref<8x128xf32, #tpu.memory_space<vmem>>, vector<8x128xf32>
      %cst_27 = arith.constant dense<0.000000e+00> : vector<8x128xf32>
      %36 = tpu.matmul %32, %35, %cst_27 {dimension_numbers = #tpu.dot_dimension_numbers<[1], [0], [0], [1], [0, 0, 1, 1], [], []>} : vector<8x8xf32>, vector<8x128xf32>, vector<8x128xf32> -> vector<8x128xf32>
      %37 = arith.addf %34, %36 : vector<8x128xf32>
      %c0_28 = arith.constant 0 : index
      %c0_29 = arith.constant 0 : index
      %38 = vector.load %arg8[%c0_28, %c0_29] : memref<1x128xf32, #tpu.memory_space<vmem>>, vector<1x128xf32>
      %39 = vector.broadcast %38 : vector<1x128xf32> to vector<8x128xf32>
      %40 = arith.addf %37, %39 : vector<8x128xf32>
      %c0_30 = arith.constant 0 : index
      %c0_31 = arith.constant 0 : index
      %41 = vector.load %arg9[%c0_30, %c0_31] : memref<8x128xf32, #tpu.memory_space<vmem>>, vector<8x128xf32>
      tpu.vector_store %arg9[%c0_30, %c0_31], %40 {strides = array<i32>} : memref<8x128xf32, #tpu.memory_space<vmem>>, vector<8x128xf32>,
    } else {
    }
    return
  }
  func.func @transform_0(%arg0: i32, %arg1: i32) -> (i32, i32) {
    %c0_i32 = arith.constant 0 : i32
    return %arg0, %arg1 : i32, i32
  }
  func.func @transform_1(%arg0: i32, %arg1: i32) -> (i32, i32) {
    %c0_i32 = arith.constant 0 : i32
    %c0_i32_0 = arith.constant 0 : i32
    return %arg1, %c0_i32 : i32, i32
  }
  func.func @transform_2(%arg0: i32, %arg1: i32) -> (i32, i32) {
    %c0_i32 = arith.constant 0 : i32
    %c0_i32_0 = arith.constant 0 : i32
    %c0_i32_1 = arith.constant 0 : i32
    return %c0_i32, %c0_i32_0 : i32, i32
  }
  func.func @transform_3(%arg0: i32, %arg1: i32) -> (i32, i32) {
    %c0_i32 = arith.constant 0 : i32
    %c0_i32_0 = arith.constant 0 : i32
    %c0_i32_1 = arith.constant 0 : i32
    return %c0_i32, %c0_i32_0 : i32, i32
  }
  func.func @transform_4(%arg0: i32, %arg1: i32) -> (i32, i32) {
    %c0_i32 = arith.constant 0 : i32
    %c0_i32_0 = arith.constant 0 : i32
    %c0_i32_1 = arith.constant 0 : i32
    return %c0_i32, %c0_i32_0 : i32, i32
  }
  func.func @transform_5(%arg0: i32, %arg1: i32) -> (i32, i32) {
    %c0_i32 = arith.constant 0 : i32
    %c0_i32_0 = arith.constant 0 : i32
    %c0_i32_1 = arith.constant 0 : i32
    return %c0_i32, %c0_i32_0 : i32, i32
  }
  func.func @transform_6(%arg0: i32, %arg1: i32) -> (i32, i32) {
    %c0_i32 = arith.constant 0 : i32
    %c0_i32_0 = arith.constant 0 : i32
    %c0_i32_1 = arith.constant 0 : i32
    return %c0_i32, %c0_i32_0 : i32, i32
  }
  func.func @transform_7(%arg0: i32, %arg1: i32) -> (i32, i32) {
    %c0_i32 = arith.constant 0 : i32
    %c0_i32_0 = arith.constant 0 : i32
    return %arg0, %c0_i32 : i32, i32
  }
}

</mosaic_0001>

<bundles_post_ra>
// kernel: tpu_custom_call.1
= control target key start
LH: loop header
LB: loop body
LE: loop exit
PB: predicated region body
PF: predicated region fallthrough
CT: control target
= control target key end

     0   :  { %12 = vsyncpa [#allocation4], 0  ;;  %s1075_s0 = inlined_call_operand.vmem [shape: f32[32,256], index: 0, kind: input, shape index: {}]   ;;  %s1076_s1 = inlined_call_operand.vmem [shape: f32[256,64], index: 1, kind: input, shape index: {}]   ;;  %s1077_s2 = inlined_call_operand.vmem [shape: f32[1,64], index: 2, kind: input, shape index: {}]   ;;  %s1078_s3 = inlined_call_operand.vmem [shape: f32[64,8], index: 3, kind: input, shape index: {}]   ;;  %s1079_s4 = inlined_call_operand.vmem [shape: f32[8,128], index: 4, kind: input, shape index: {}]   ;;  %s1080_s5 = inlined_call_operand.vmem [shape: f32[8,128], index: 5, kind: input, shape index: {}]   ;;  %s1081_s6 = inlined_call_operand.vmem [shape: f32[1,128], index: 6, kind: input, shape index: {}]   ;;  %s1082_s7 = inlined_call_operand.hbm [shape: f32[32,128], index: 7, kind: output, shape index: {}]  }
   0x1   :  { %14 = vsyncpa [#allocation4 + $0x1], 0  ;;  %s842_s24 = smov 0   ;;  %s844_s25 = smov 0  }
   0x2   :  { %s846_s26 = smov 0   ;;  %s848_s27 = smov 0  }
   0x3   :  { %s850_s28 = smov 0   ;;  %s852_s29 = smov 0  }
   0x4 LB: > { %s637_s30 = sadd.s32 4294967295, %s797_s29   ;;  %s638_s8 = sadd.s32 4294967294, %s797_s29   ;;  %s797_s29 = sphi %s852_s29, %s20_s29   ;;  %s793_s28 = sphi %s850_s28, %s1089_s28   ;;  %s789_s27 = sphi %s848_s27, %s1088_s27   ;;  %s785_s26 = sphi %s846_s26, %s1087_s26   ;;  %s781_s25 = sphi %s844_s25, %s1086_s25   ;;  %s777_s24 = sphi %s842_s24, %s1085_s24  }
   0x5   : > { %s32_s9 = sadd.s32 1, %s793_s28  ;;  %s198_s10 = sadd.s32 1, %s785_s26 }
   0x6   : > { %p34_p0 = scmp.ge.s32.totalorder %s32_s9, 4  ;;  %p208_p1 = scmp.ne.s32.totalorder %s785_s26, %s781_s25 }
   0x7   : > { %p209_p2 = scmp.eq.s32.totalorder %s637_s30, 3  ;;  %p214_p3 = scmp.ne.s32.totalorder %s781_s25, %s777_s24 }
   0x8   : > { %s1091_s9 = smov (%p34_p0, %s32_s9), 0  ;;  %p215_p5 = scmp.eq.s32.totalorder %s638_s8, 3 }
   0x9   : > { %p882_p4 = por %p209_p2, %p208_p1  ;;  %s195_s12 = ssub.s32 %s793_s28, %s1091_s9 }
   0xa   : > { %p642_p6 = scmp.ge.s32.totalorder %s797_s29, 1  ;;  %p196_p7 = scmp.eq.s32.totalorder %s195_s12, 0 }
   0xb   : > { %p889_p8 = por %p215_p5, %p214_p3  ;;  %p270_p9 = scmp.lt.s32.totalorder %s797_s29, 5 }
   0xc   : > { %s895_s14 = scalar_select %p196_p7, %s785_s26, %s198_s10  }
   0xd   : > { %p271_p10 = pnand %p642_p6, %p270_p9 }
   0xe   : > { %p312_p11 = scmp.lt.s32.totalorder (!%p271_p10), %s789_s27, 3  ;;  %s308_s15 = sand.u32 (!%p271_p10), 1, %s781_s25  }
   0xf   : > { %274 = sbr.rel (%p271_p10) target bundleno = 488 (0x1e8), region = 48  ;;  %s643_s17 = sshll.u32 (!%p271_p10), %s308_s15, 3 }
  0x10   : > { %s651_s18 = sshll.u32 (!%p271_p10), %s789_s27, 3  ;;  %s310_s30 = scalar_lea.vmem (!%p271_p10), [#allocation3], %s643_s17 }
  0x11   : > { %s544_s21 = scalar_lea.hbm (!%p271_p10), %s1082_s7, %s651_s18  ;;  %s546_s8 = sshll.u32 (!%p271_p10), %s310_s30, 4  ;;  %s547_s8 = int_to_ptr.vmem [resolvable:$true] %s546_s8 }
  0x12   : > { %s548_s10 = sshll.u32 (!%p271_p10), %s544_s21, 4  ;;  %s549_s10 = int_to_ptr.hbm [resolvable:$true] %s548_s10 }
  0x14   : > { %v351_v0 = vld [vmem:[%s1076_s1 + $0x78] sm:$0xff]  ;;  %v350_v2 = vld [vmem:[%s1076_s1 + $0x70] sm:$0xff]  ;;  %v349_v4 = vld [vmem:[%s1076_s1 + $0x68] sm:$0xff]  ;;  %s313_s20 = scalar_select %p312_p11, %s789_s27, 3  ;;  %vm331_vm0 = vcmask 523264   ;;  %v799_v34 = vmov 0.0  }
  0x15   : > { %v367_v1 = vld [vmem:[%s1076_s1 + $0xf8] sm:$0xff]  ;;  %368 = vmatpush.msra.mxu0 %v351_v0  ;;  %v366_v3 = vld [vmem:[%s1076_s1 + $0xf0] sm:$0xff]  ;;  %v365_v5 = vld [vmem:[%s1076_s1 + $0xe8] sm:$0xff]  ;;  %332 = vst.msk [vmem:[#allocation2] sm:$0xff] %vm331_vm0, %v799_v34  ;;  %v800_v53 = vmov 8.0   ;;  %v801_v58 = vmov 7.0  }
  0x16   : > { %388 = vmatpush.msra.mxu1 %v367_v1  ;;  %v348_v6 = vld [vmem:[%s1076_s1 + $0x60] sm:$0xff]  ;;  %v347_v8 = vld [vmem:[%s1076_s1 + $0x58] sm:$0xff]  ;;  %v346_v10 = vld [vmem:[%s1076_s1 + $0x50] sm:$0xff]  ;;  %s654_s16 = sshll.u32 %s313_s20, 4  ;;  %715 = vrcp.f32 %v800_v53  ;;  %vm480_vm3 = vcmask 64512   ;;  %s534_s20 = scalar_lea.sflag [#allocation4], %s308_s15 }
  0x17   : > { %369 = vmatpush.msra.mxu0 %v350_v2  ;;  %v364_v7 = vld [vmem:[%s1076_s1 + $0xe0] sm:$0xff]  ;;  %v363_v9 = vld [vmem:[%s1076_s1 + $0xd8] sm:$0xff]  ;;  %v362_v11 = vld [vmem:[%s1076_s1 + $0xd0] sm:$0xff]  ;;  %s319_s12 = scalar_lea.vmem %s1075_s0, %s654_s16  ;;  %717 = vrcp.f32 %v801_v58  ;;  %s733_s27 = sshra.s32 %s549_s10, 4  ;;  %s734_s27 = int_to_ptr.hbm [resolvable:$true] %s733_s27 }
  0x18   : > { %389 = vmatpush.msra.mxu1 %v366_v3  ;;  %v345_v12 = vld [vmem:[%s1076_s1 + $0x48] sm:$0xff]  ;;  %v344_v14 = vld [vmem:[%s1076_s1 + $0x40] sm:$0xff]  ;;  %v343_v16 = vld [vmem:[%s1076_s1 + $0x38] sm:$0xff]  ;;  %s739_s16 = scalar_lea.hbm %s1082_s7, 32  ;;  %p740_p1 = scmp.lt.s32.totalorder %s734_s27, %s1082_s7 }
  0x19   : > { %370 = vmatpush.msra.mxu0 %v349_v4  ;;  %v361_v13 = vld [vmem:[%s1076_s1 + $0xc8] sm:$0xff]  ;;  %v360_v15 = vld [vmem:[%s1076_s1 + $0xc0] sm:$0xff]  ;;  %v359_v17 = vld [vmem:[%s1076_s1 + $0xb8] sm:$0xff] }
  0x1a   : > { %390 = vmatpush.msra.mxu1 %v365_v5  ;;  %v342_v18 = vld [vmem:[%s1076_s1 + $0x30] sm:$0xff]  ;;  %v341_v20 = vld [vmem:[%s1076_s1 + $0x28] sm:$0xff]  ;;  %v340_v22 = vld [vmem:[%s1076_s1 + $0x20] sm:$0xff] }
  0x1b   : > { %371 = vmatpush.msra.mxu0 %v348_v6  ;;  %v358_v19 = vld [vmem:[%s1076_s1 + $0xb0] sm:$0xff]  ;;  %v357_v21 = vld [vmem:[%s1076_s1 + $0xa8] sm:$0xff]  ;;  %v356_v23 = vld [vmem:[%s1076_s1 + $0xa0] sm:$0xff] }
  0x1c   : > { %391 = vmatpush.msra.mxu1 %v364_v7  ;;  %v339_v24 = vld [vmem:[%s1076_s1 + $0x18] sm:$0xff]  ;;  %v338_v26 = vld [vmem:[%s1076_s1 + $0x10] sm:$0xff]  ;;  %v337_v28 = vld [vmem:[%s1076_s1 + $0x8] sm:$0xff]  ;;  %v716_v54 = vpop.eup %715 }
  0x1d   : > { %372 = vmatpush.msra.mxu0 %v347_v8  ;;  %v355_v25 = vld [vmem:[%s1076_s1 + $0x98] sm:$0xff]  ;;  %v354_v27 = vld [vmem:[%s1076_s1 + $0x90] sm:$0xff]  ;;  %v353_v29 = vld [vmem:[%s1076_s1 + $0x88] sm:$0xff]  ;;  %v460_v57 = vmul.f32 8.0, %v716_v54  ;;  %v718_v60 = vpop.eup %717  ;;  %vm464_vm1 = vweird.f32 %v716_v54 }
  0x1e   : > { %392 = vmatpush.msra.mxu1 %v363_v9  ;;  %v336_v30 = vld [vmem:[%s1076_s1] sm:$0xff]  ;;  %v335_v33 = vld [vmem:[%s319_s12 + $0x8] sm:$0xff]  ;;  %v429_v35 = vld [vmem:[%s1078_s3 + $0x38] sm:$0xff]  ;;  %v471_v62 = vmul.f32 7.0, %v718_v60  ;;  %vm475_vm2 = vweird.f32 %v718_v60 }
  0x1f   : > { %373 = vmatpush.msra.mxu0 %v346_v10  ;;  %v352_v31 = vld [vmem:[%s1076_s1 + $0x80] sm:$0xff]  ;;  %444 = vmatpush.msra.mxu2 %v429_v35  ;;  %v428_v36 = vld [vmem:[%s1078_s3 + $0x30] sm:$0xff]  ;;  %v427_v37 = vld [vmem:[%s1078_s3 + $0x28] sm:$0xff]  ;;  %v461_v59 = vsub.f32 1.0, %v460_v57 }
  0x20   : > { %393 = vmatpush.msra.mxu1 %v362_v11  ;;  %v334_v32 = vld [vmem:[%s319_s12] sm:$0xff]  ;;  %v425_v39 = vld [vmem:[%s1078_s3 + $0x18] sm:$0xff]  ;;  %v424_v40 = vld [vmem:[%s1078_s3 + $0x10] sm:$0xff]  ;;  %v472_v0 = vsub.f32 1.0, %v471_v62  ;;  %s735_s12 = scalar_lea.hbm %s734_s27, 8 }
  0x21   : > { %374 = vmatpush.msra.mxu0 %v345_v12  ;;  %445 = vmatpush.msra.mxu2 %v428_v36  ;;  %v426_v38 = vld [vmem:[%s1078_s3 + $0x20] sm:$0xff]  ;;  %v423_v41 = vld [vmem:[%s1078_s3 + $0x8] sm:$0xff]  ;;  %v462_v61 = vmul.f32 %v716_v54, %v461_v59  ;;  %p736_p12 = scmp.ne.s32.totalorder %s734_s27, %s735_s12  ;;  %p741_p2 = scmp.lt.s32.totalorder %s739_s16, %s735_s12 }
  0x22   : > { %394 = vmatpush.msra.mxu1 %v361_v13  ;;  %v422_v42 = vld [vmem:[%s1078_s3] sm:$0xff]  ;;  %v473_v3 = vmul.f32 %v718_v60, %v472_v0 }
  0x23   : > { %375 = vmatpush.msra.mxu0 %v344_v14  ;;  %446 = vmatpush.msra.mxu2 %v427_v37  ;;  %v333_v44 = vld [vmem:[#allocation2] sm:$0xff]  ;;  %v463_v63 = vadd.f32 %v716_v54, %v462_v61  ;;  %p737_p13 = pnand %p736_p12, %p882_p4  ;;  %p742_p3 = por %p741_p2, %p740_p1 }
  0x24   : > { %395 = vmatpush.msra.mxu1 %v360_v15  ;;  %v713_v48 = vld [vmem:[%s1077_s2] ss:$0 sm:$0xff]  ;;  %v474_v5 = vadd.f32 %v718_v60, %v473_v3 }
  0x25   : > { %376 = vmatpush.msra.mxu0 %v343_v16  ;;  %447 = vmatpush.msra.mxu2 %v426_v38  ;;  %v479_v55 = vld [vmem:[%s1080_s5] sm:$0xff]  ;;  %v465_v2 = vsel %vm464_vm1, %v716_v54, %v463_v63  ;;  %p738_p0 = pneg %p737_p13 }
  0x26   : > { %396 = vmatpush.msra.mxu1 %v359_v17  ;;  %499 = vmatpush.msra.mxu3 %v479_v55  ;;  %v478_v56 = vld [vmem:[%s1079_s4] sm:$0xff]  ;;  %v476_v9 = vsel %vm475_vm2, %v718_v60, %v474_v5 }
  0x27   : > { %377 = vmatpush.msra.mxu0 %v342_v18  ;;  %448 = vmatpush.msra.mxu2 %v425_v39  ;;  %v714_v13 = vld [vmem:[%s1081_s6] ss:$0 sm:$0xff]  ;;  %p743_p5 = pnand %p742_p3, %p738_p0 }
  0x28   : > { %397 = vmatpush.msra.mxu1 %v358_v19  ;;  %522 = vmatpush.msrb.mxu3 %v478_v56 }
  0x29   : > { %378 = vmatpush.msra.mxu0 %v341_v20  ;;  %449 = vmatpush.msra.mxu2 %v424_v40 }
  0x2a   : > { %398 = vmatpush.msra.mxu1 %v357_v21 }
  0x2b   : > { %379 = vmatpush.msra.mxu0 %v340_v22  ;;  %450 = vmatpush.msra.mxu2 %v423_v41 }
  0x2c   : > { %399 = vmatpush.msra.mxu1 %v356_v23 }
  0x2d   : > { %380 = vmatpush.msra.mxu0 %v339_v24  ;;  %451 = vmatpush.msra.mxu2 %v422_v42 }
  0x2e   : > { %400 = vmatpush.msra.mxu1 %v355_v25 }
  0x2f   : > { %381 = vmatpush.msra.mxu0 %v338_v26 }
  0x30   : > { %401 = vmatpush.msra.mxu1 %v354_v27 }
  0x31   : > { %382 = vmatpush.msra.mxu0 %v337_v28 }
  0x32   : > { %402 = vmatpush.msra.mxu1 %v353_v29 }
  0x33   : > { %383 = vmatpush.msra.mxu0 %v336_v30 }
  0x34   : > { %403 = vmatpush.msra.mxu1 %v352_v31  ;;  %384 = vmatmul.f32.vlgmr.msra.gmra.mxu0 %v334_v32 }
  0x35   : > { %404 = vmatmul.f32.vlgmr.msra.gmra.mxu1 %v335_v33 }
  0xb1   : > { %v385_v43 = vpop.f32.mrf.mxu0 }
  0xb2   : > { %v405_v45 = vpop.f32.mrf.mxu1 }
  0xb3   : > { %v406_v46 = vadd.f32 %v405_v45, %v385_v43 }
  0xb5   : > { %v408_v47 = vadd.f32 %v406_v46, %v333_v44 }
  0xb7   : > { %410 = vst.msk [vmem:[#allocation2] sm:$0xff] %vm331_vm0, %v408_v47 }
  0xbe   : > { %v414_v49 = vld [vmem:[#allocation2] sm:$0xff] }
  0xbf   : > { %v419_v50 = vadd.f32 %v713_v48, %v414_v49 }
  0xc1   : > { %v420_v51 = vmax.f32 %v419_v50, 0.0 }
  0xc3   : > { %646 = vmatmul.msk.f32.vlgmr.msra.gmra.mxu2 %vm331_vm0, %v420_v51  ;;  %v421_v52 = vmul.f32 %v420_v51, %v420_v51 }
  0xcb   : > { %647 = vmatmul.msk.f32.gmra.mxu2 %vm331_vm0, %v421_v52 }
 0x146   : > { %v453_v1 = vpop.f32.mrf.mxu2 }
 0x147   : > { %v466_v4 = vmul.f32 %v465_v2, %v453_v1 }
 0x149   : > { %v467_v6 = vmul.f32 %v466_v4, %v453_v1 }
 0x14e   : > { %v456_v7 = vpop.f32.mrf.mxu2 }
 0x14f   : > { %v468_v8 = vsub.f32 %v456_v7, %v467_v6 }
 0x151   : > { %v469_v10 = vmax.f32 %v468_v8, 0.0 }
 0x153   : > { %v477_v11 = vmul.f32 %v476_v9, %v469_v10 }
 0x155   : > { %648 = vmatmul.msk.f32.vlgmr.msra.gmra.mxu3 %vm480_vm3, %v477_v11 }
 0x15d   : > { %649 = vmatmul.msk.f32.vlgmr.msrb.gmra.mxu3 %vm480_vm3, %v466_v4 }
 0x1d8   : > { %v501_v12 = vpop.f32.mrf.mxu3 }
 0x1e0   : > { %v524_v14 = vpop.f32.mrf.mxu3 }
 0x1e1   : > { %v525_v15 = vadd.f32 %v524_v14, %v501_v12 }
 0x1e3   : > { %v531_v16 = vadd.f32 %v714_v13, %v525_v15 }
 0x1e5   : > { %532 = vst [vmem:[%s310_s30] sm:$0xff] %v531_v16 }
 0x1e6   : > { %746 = shalt.err (!%p743_p5)
}
 0x1e7   : > { %655 = dma.vmem_to_hbm [thread:$0]  (%p882_p4), %s547_s8, 128, %s549_s10, %s534_s20  }
 0x1e8 PF: > { %p661_p6 = scmp.ge.s32.totalorder %s797_s29, 2  ;;  %s560_s15 = sand.u32 1, %s777_s24  }
 0x1e9   : > { %s561_s21 = scalar_lea.sflag [#allocation4], %s560_s15 }
 0x1ea   : > { %p658_p7 = pnand %p661_p6, %p889_p8 }
 0x1ec   : > { %p659_p9 = pneg %p658_p7 }
 0x1ee   : > { %772 = dma.done.wait (%p659_p9), %s561_s21, 128  }
 0x1ef   : > { %774 = vsyncadd (%p659_p9), %s561_s21, 4294967168  ;;  %s20_s29 = sadd.s32 1, %s797_s29   ;;  %s1085_s24 = smov %s781_s25 }
 0x1f0   : > { %p17_p10 = scmp.ge.s32.totalorder %s20_s29, 6   ;;  %s1086_s25 = smov %s785_s26 }
 0x1f1   : > { %s1087_s26 = smov %s895_s14  ;;  %s1088_s27 = smov %s793_s28 }
 0x1f2   : > { %s1089_s28 = smov %s1091_s9  ;;  %19 = sbr.rel (!%p17_p10) target bundleno = 4 (0x4), region = 94 }
 0x1f7   :  { %567 = vsyncpa [#allocation4], 1 }
 0x1f8   :  { %569 = vsyncpa [#allocation4 + $0x1], 1 }

// kernel: tpu_custom_call.1
= control target key start
LH: loop header
LB: loop body
LE: loop exit
PB: predicated region body
PF: predicated region fallthrough
CT: control target
= control target key end

     0   :  { %12 = vsyncpa [#allocation4], 0  ;;  %s1075_s0 = inlined_call_operand.vmem [shape: f32[32,256], index: 0, kind: input, shape index: {}]   ;;  %s1076_s1 = inlined_call_operand.vmem [shape: f32[256,64], index: 1, kind: input, shape index: {}]   ;;  %s1077_s2 = inlined_call_operand.vmem [shape: f32[1,64], index: 2, kind: input, shape index: {}]   ;;  %s1078_s3 = inlined_call_operand.vmem [shape: f32[64,8], index: 3, kind: input, shape index: {}]   ;;  %s1079_s4 = inlined_call_operand.vmem [shape: f32[8,128], index: 4, kind: input, shape index: {}]   ;;  %s1080_s5 = inlined_call_operand.vmem [shape: f32[8,128], index: 5, kind: input, shape index: {}]   ;;  %s1081_s6 = inlined_call_operand.vmem [shape: f32[1,128], index: 6, kind: input, shape index: {}]   ;;  %s1082_s7 = inlined_call_operand.hbm [shape: f32[32,128], index: 7, kind: output, shape index: {}]  }
   0x1   :  { %14 = vsyncpa [#allocation4 + $0x1], 0  ;;  %s842_s24 = smov 0   ;;  %s844_s25 = smov 0  }
   0x2   :  { %s846_s26 = smov 0   ;;  %s848_s27 = smov 0  }
   0x3   :  { %s850_s28 = smov 0   ;;  %s852_s29 = smov 0  }
   0x4 LB: > { %s637_s30 = sadd.s32 4294967295, %s797_s29   ;;  %s638_s8 = sadd.s32 4294967294, %s797_s29   ;;  %s797_s29 = sphi %s852_s29, %s20_s29   ;;  %s793_s28 = sphi %s850_s28, %s1089_s28   ;;  %s789_s27 = sphi %s848_s27, %s1088_s27   ;;  %s785_s26 = sphi %s846_s26, %s1087_s26   ;;  %s781_s25 = sphi %s844_s25, %s1086_s25   ;;  %s777_s24 = sphi %s842_s24, %s1085_s24  }
   0x5   : > { %s32_s9 = sadd.s32 1, %s793_s28  ;;  %s198_s10 = sadd.s32 1, %s785_s26 }
   0x6   : > { %p34_p0 = scmp.ge.s32.totalorder %s32_s9, 4  ;;  %p208_p1 = scmp.ne.s32.totalorder %s785_s26, %s781_s25 }
   0x7   : > { %p209_p2 = scmp.eq.s32.totalorder %s637_s30, 3  ;;  %p214_p3 = scmp.ne.s32.totalorder %s781_s25, %s777_s24 }
   0x8   : > { %s1091_s9 = smov (%p34_p0, %s32_s9), 0  ;;  %p215_p5 = scmp.eq.s32.totalorder %s638_s8, 3 }
   0x9   : > { %p882_p4 = por %p209_p2, %p208_p1  ;;  %s195_s12 = ssub.s32 %s793_s28, %s1091_s9 }
   0xa   : > { %p642_p6 = scmp.ge.s32.totalorder %s797_s29, 1  ;;  %p196_p7 = scmp.eq.s32.totalorder %s195_s12, 0 }
   0xb   : > { %p889_p8 = por %p215_p5, %p214_p3  ;;  %p270_p9 = scmp.lt.s32.totalorder %s797_s29, 5 }
   0xc   : > { %s895_s14 = scalar_select %p196_p7, %s785_s26, %s198_s10  }
   0xd   : > { %p271_p10 = pnand %p642_p6, %p270_p9 }
   0xe   : > { %p312_p11 = scmp.lt.s32.totalorder (!%p271_p10), %s789_s27, 3  ;;  %s308_s15 = sand.u32 (!%p271_p10), 1, %s781_s25  }
   0xf   : > { %274 = sbr.rel (%p271_p10) target bundleno = 488 (0x1e8), region = 48  ;;  %s643_s17 = sshll.u32 (!%p271_p10), %s308_s15, 3 }
  0x10   : > { %s651_s18 = sshll.u32 (!%p271_p10), %s789_s27, 3  ;;  %s310_s30 = scalar_lea.vmem (!%p271_p10), [#allocation3], %s643_s17 }
  0x11   : > { %s544_s21 = scalar_lea.hbm (!%p271_p10), %s1082_s7, %s651_s18  ;;  %s546_s8 = sshll.u32 (!%p271_p10), %s310_s30, 4  ;;  %s547_s8 = int_to_ptr.vmem [resolvable:$true] %s546_s8 }
  0x12   : > { %s548_s10 = sshll.u32 (!%p271_p10), %s544_s21, 4  ;;  %s549_s10 = int_to_ptr.hbm [resolvable:$true] %s548_s10 }
  0x14   : > { %v351_v0 = vld [vmem:[%s1076_s1 + $0x78] sm:$0xff]  ;;  %v350_v2 = vld [vmem:[%s1076_s1 + $0x70] sm:$0xff]  ;;  %v349_v4 = vld [vmem:[%s1076_s1 + $0x68] sm:$0xff]  ;;  %s313_s20 = scalar_select %p312_p11, %s789_s27, 3  ;;  %vm331_vm0 = vcmask 523264   ;;  %v799_v34 = vmov 0.0  }
  0x15   : > { %v367_v1 = vld [vmem:[%s1076_s1 + $0xf8] sm:$0xff]  ;;  %368 = vmatpush.msra.mxu0 %v351_v0  ;;  %v366_v3 = vld [vmem:[%s1076_s1 + $0xf0] sm:$0xff]  ;;  %v365_v5 = vld [vmem:[%s1076_s1 + $0xe8] sm:$0xff]  ;;  %332 = vst.msk [vmem:[#allocation2] sm:$0xff] %vm331_vm0, %v799_v34  ;;  %v800_v53 = vmov 8.0   ;;  %v801_v58 = vmov 7.0  }
  0x16   : > { %388 = vmatpush.msra.mxu1 %v367_v1  ;;  %v348_v6 = vld [vmem:[%s1076_s1 + $0x60] sm:$0xff]  ;;  %v347_v8 = vld [vmem:[%s1076_s1 + $0x58] sm:$0xff]  ;;  %v346_v10 = vld [vmem:[%s1076_s1 + $0x50] sm:$0xff]  ;;  %s654_s16 = sshll.u32 %s313_s20, 4  ;;  %715 = vrcp.f32 %v800_v53  ;;  %vm480_vm3 = vcmask 64512   ;;  %s534_s20 = scalar_lea.sflag [#allocation4], %s308_s15 }
  0x17   : > { %369 = vmatpush.msra.mxu0 %v350_v2  ;;  %v364_v7 = vld [vmem:[%s1076_s1 + $0xe0] sm:$0xff]  ;;  %v363_v9 = vld [vmem:[%s1076_s1 + $0xd8] sm:$0xff]  ;;  %v362_v11 = vld [vmem:[%s1076_s1 + $0xd0] sm:$0xff]  ;;  %s319_s12 = scalar_lea.vmem %s1075_s0, %s654_s16  ;;  %717 = vrcp.f32 %v801_v58  ;;  %s733_s27 = sshra.s32 %s549_s10, 4  ;;  %s734_s27 = int_to_ptr.hbm [resolvable:$true] %s733_s27 }
  0x18   : > { %389 = vmatpush.msra.mxu1 %v366_v3  ;;  %v345_v12 = vld [vmem:[%s1076_s1 + $0x48] sm:$0xff]  ;;  %v344_v14 = vld [vmem:[%s1076_s1 + $0x40] sm:$0xff]  ;;  %v343_v16 = vld [vmem:[%s1076_s1 + $0x38] sm:$0xff]  ;;  %s739_s16 = scalar_lea.hbm %s1082_s7, 32  ;;  %p740_p1 = scmp.lt.s32.totalorder %s734_s27, %s1082_s7 }
  0x19   : > { %370 = vmatpush.msra.mxu0 %v349_v4  ;;  %v361_v13 = vld [vmem:[%s1076_s1 + $0xc8] sm:$0xff]  ;;  %v360_v15 = vld [vmem:[%s1076_s1 + $0xc0] sm:$0xff]  ;;  %v359_v17 = vld [vmem:[%s1076_s1 + $0xb8] sm:$0xff] }
  0x1a   : > { %390 = vmatpush.msra.mxu1 %v365_v5  ;;  %v342_v18 = vld [vmem:[%s1076_s1 + $0x30] sm:$0xff]  ;;  %v341_v20 = vld [vmem:[%s1076_s1 + $0x28] sm:$0xff]  ;;  %v340_v22 = vld [vmem:[%s1076_s1 + $0x20] sm:$0xff] }
  0x1b   : > { %371 = vmatpush.msra.mxu0 %v348_v6  ;;  %v358_v19 = vld [vmem:[%s1076_s1 + $0xb0] sm:$0xff]  ;;  %v357_v21 = vld [vmem:[%s1076_s1 + $0xa8] sm:$0xff]  ;;  %v356_v23 = vld [vmem:[%s1076_s1 + $0xa0] sm:$0xff] }
  0x1c   : > { %391 = vmatpush.msra.mxu1 %v364_v7  ;;  %v339_v24 = vld [vmem:[%s1076_s1 + $0x18] sm:$0xff]  ;;  %v338_v26 = vld [vmem:[%s1076_s1 + $0x10] sm:$0xff]  ;;  %v337_v28 = vld [vmem:[%s1076_s1 + $0x8] sm:$0xff]  ;;  %v716_v54 = vpop.eup %715 }
  0x1d   : > { %372 = vmatpush.msra.mxu0 %v347_v8  ;;  %v355_v25 = vld [vmem:[%s1076_s1 + $0x98] sm:$0xff]  ;;  %v354_v27 = vld [vmem:[%s1076_s1 + $0x90] sm:$0xff]  ;;  %v353_v29 = vld [vmem:[%s1076_s1 + $0x88] sm:$0xff]  ;;  %v460_v57 = vmul.f32 8.0, %v716_v54  ;;  %v718_v60 = vpop.eup %717  ;;  %vm464_vm1 = vweird.f32 %v716_v54 }
  0x1e   : > { %392 = vmatpush.msra.mxu1 %v363_v9  ;;  %v336_v30 = vld [vmem:[%s1076_s1] sm:$0xff]  ;;  %v335_v33 = vld [vmem:[%s319_s12 + $0x8] sm:$0xff]  ;;  %v429_v35 = vld [vmem:[%s1078_s3 + $0x38] sm:$0xff]  ;;  %v471_v62 = vmul.f32 7.0, %v718_v60  ;;  %vm475_vm2 = vweird.f32 %v718_v60 }
  0x1f   : > { %373 = vmatpush.msra.mxu0 %v346_v10  ;;  %v352_v31 = vld [vmem:[%s1076_s1 + $0x80] sm:$0xff]  ;;  %444 = vmatpush.msra.mxu2 %v429_v35  ;;  %v428_v36 = vld [vmem:[%s1078_s3 + $0x30] sm:$0xff]  ;;  %v427_v37 = vld [vmem:[%s1078_s3 + $0x28] sm:$0xff]  ;;  %v461_v59 = vsub.f32 1.0, %v460_v57 }
  0x20   : > { %393 = vmatpush.msra.mxu1 %v362_v11  ;;  %v334_v32 = vld [vmem:[%s319_s12] sm:$0xff]  ;;  %v425_v39 = vld [vmem:[%s1078_s3 + $0x18] sm:$0xff]  ;;  %v424_v40 = vld [vmem:[%s1078_s3 + $0x10] sm:$0xff]  ;;  %v472_v0 = vsub.f32 1.0, %v471_v62  ;;  %s735_s12 = scalar_lea.hbm %s734_s27, 8 }
  0x21   : > { %374 = vmatpush.msra.mxu0 %v345_v12  ;;  %445 = vmatpush.msra.mxu2 %v428_v36  ;;  %v426_v38 = vld [vmem:[%s1078_s3 + $0x20] sm:$0xff]  ;;  %v423_v41 = vld [vmem:[%s1078_s3 + $0x8] sm:$0xff]  ;;  %v462_v61 = vmul.f32 %v716_v54, %v461_v59  ;;  %p736_p12 = scmp.ne.s32.totalorder %s734_s27, %s735_s12  ;;  %p741_p2 = scmp.lt.s32.totalorder %s739_s16, %s735_s12 }
  0x22   : > { %394 = vmatpush.msra.mxu1 %v361_v13  ;;  %v422_v42 = vld [vmem:[%s1078_s3] sm:$0xff]  ;;  %v473_v3 = vmul.f32 %v718_v60, %v472_v0 }
  0x23   : > { %375 = vmatpush.msra.mxu0 %v344_v14  ;;  %446 = vmatpush.msra.mxu2 %v427_v37  ;;  %v333_v44 = vld [vmem:[#allocation2] sm:$0xff]  ;;  %v463_v63 = vadd.f32 %v716_v54, %v462_v61  ;;  %p737_p13 = pnand %p736_p12, %p882_p4  ;;  %p742_p3 = por %p741_p2, %p740_p1 }
  0x24   : > { %395 = vmatpush.msra.mxu1 %v360_v15  ;;  %v713_v48 = vld [vmem:[%s1077_s2] ss:$0 sm:$0xff]  ;;  %v474_v5 = vadd.f32 %v718_v60, %v473_v3 }
  0x25   : > { %376 = vmatpush.msra.mxu0 %v343_v16  ;;  %447 = vmatpush.msra.mxu2 %v426_v38  ;;  %v479_v55 = vld [vmem:[%s1080_s5] sm:$0xff]  ;;  %v465_v2 = vsel %vm464_vm1, %v716_v54, %v463_v63  ;;  %p738_p0 = pneg %p737_p13 }
  0x26   : > { %396 = vmatpush.msra.mxu1 %v359_v17  ;;  %499 = vmatpush.msra.mxu3 %v479_v55  ;;  %v478_v56 = vld [vmem:[%s1079_s4] sm:$0xff]  ;;  %v476_v9 = vsel %vm475_vm2, %v718_v60, %v474_v5 }
  0x27   : > { %377 = vmatpush.msra.mxu0 %v342_v18  ;;  %448 = vmatpush.msra.mxu2 %v425_v39  ;;  %v714_v13 = vld [vmem:[%s1081_s6] ss:$0 sm:$0xff]  ;;  %p743_p5 = pnand %p742_p3, %p738_p0 }
  0x28   : > { %397 = vmatpush.msra.mxu1 %v358_v19  ;;  %522 = vmatpush.msrb.mxu3 %v478_v56 }
  0x29   : > { %378 = vmatpush.msra.mxu0 %v341_v20  ;;  %449 = vmatpush.msra.mxu2 %v424_v40 }
  0x2a   : > { %398 = vmatpush.msra.mxu1 %v357_v21 }
  0x2b   : > { %379 = vmatpush.msra.mxu0 %v340_v22  ;;  %450 = vmatpush.msra.mxu2 %v423_v41 }
  0x2c   : > { %399 = vmatpush.msra.mxu1 %v356_v23 }
  0x2d   : > { %380 = vmatpush.msra.mxu0 %v339_v24  ;;  %451 = vmatpush.msra.mxu2 %v422_v42 }
  0x2e   : > { %400 = vmatpush.msra.mxu1 %v355_v25 }
  0x2f   : > { %381 = vmatpush.msra.mxu0 %v338_v26 }
  0x30   : > { %401 = vmatpush.msra.mxu1 %v354_v27 }
  0x31   : > { %382 = vmatpush.msra.mxu0 %v337_v28 }
  0x32   : > { %402 = vmatpush.msra.mxu1 %v353_v29 }
  0x33   : > { %383 = vmatpush.msra.mxu0 %v336_v30 }
  0x34   : > { %403 = vmatpush.msra.mxu1 %v352_v31  ;;  %384 = vmatmul.f32.vlgmr.msra.gmra.mxu0 %v334_v32 }
  0x35   : > { %404 = vmatmul.f32.vlgmr.msra.gmra.mxu1 %v335_v33 }
  0xb1   : > { %v385_v43 = vpop.f32.mrf.mxu0 }
  0xb2   : > { %v405_v45 = vpop.f32.mrf.mxu1 }
  0xb3   : > { %v406_v46 = vadd.f32 %v405_v45, %v385_v43 }
  0xb5   : > { %v408_v47 = vadd.f32 %v406_v46, %v333_v44 }
  0xb7   : > { %410 = vst.msk [vmem:[#allocation2] sm:$0xff] %vm331_vm0, %v408_v47 }
  0xbe   : > { %v414_v49 = vld [vmem:[#allocation2] sm:$0xff] }
  0xbf   : > { %v419_v50 = vadd.f32 %v713_v48, %v414_v49 }
  0xc1   : > { %v420_v51 = vmax.f32 %v419_v50, 0.0 }
  0xc3   : > { %646 = vmatmul.msk.f32.vlgmr.msra.gmra.mxu2 %vm331_vm0, %v420_v51  ;;  %v421_v52 = vmul.f32 %v420_v51, %v420_v51 }
  0xcb   : > { %647 = vmatmul.msk.f32.gmra.mxu2 %vm331_vm0, %v421_v52 }
 0x146   : > { %v453_v1 = vpop.f32.mrf.mxu2 }
 0x147   : > { %v466_v4 = vmul.f32 %v465_v2, %v453_v1 }
 0x149   : > { %v467_v6 = vmul.f32 %v466_v4, %v453_v1 }
 0x14e   : > { %v456_v7 = vpop.f32.mrf.mxu2 }
 0x14f   : > { %v468_v8 = vsub.f32 %v456_v7, %v467_v6 }
 0x151   : > { %v469_v10 = vmax.f32 %v468_v8, 0.0 }
 0x153   : > { %v477_v11 = vmul.f32 %v476_v9, %v469_v10 }
 0x155   : > { %648 = vmatmul.msk.f32.vlgmr.msra.gmra.mxu3 %vm480_vm3, %v477_v11 }
 0x15d   : > { %649 = vmatmul.msk.f32.vlgmr.msrb.gmra.mxu3 %vm480_vm3, %v466_v4 }
 0x1d8   : > { %v501_v12 = vpop.f32.mrf.mxu3 }
 0x1e0   : > { %v524_v14 = vpop.f32.mrf.mxu3 }
 0x1e1   : > { %v525_v15 = vadd.f32 %v524_v14, %v501_v12 }
 0x1e3   : > { %v531_v16 = vadd.f32 %v714_v13, %v525_v15 }
 0x1e5   : > { %532 = vst [vmem:[%s310_s30] sm:$0xff] %v531_v16 }
 0x1e6   : > { %746 = shalt.err (!%p743_p5)
}
 0x1e7   : > { %655 = dma.vmem_to_hbm [thread:$0]  (%p882_p4), %s547_s8, 128, %s549_s10, %s534_s20  }
 0x1e8 PF: > { %p661_p6 = scmp.ge.s32.totalorder %s797_s29, 2  ;;  %s560_s15 = sand.u32 1, %s777_s24  }
 0x1e9   : > { %s561_s21 = scalar_lea.sflag [#allocation4], %s560_s15 }
 0x1ea   : > { %p658_p7 = pnand %p661_p6, %p889_p8 }
 0x1ec   : > { %p659_p9 = pneg %p658_p7 }
 0x1ee   : > { %772 = dma.done.wait (%p659_p9), %s561_s21, 128  }
 0x1ef   : > { %774 = vsyncadd (%p659_p9), %s561_s21, 4294967168  ;;  %s20_s29 = sadd.s32 1, %s797_s29   ;;  %s1085_s24 = smov %s781_s25 }
 0x1f0   : > { %p17_p10 = scmp.ge.s32.totalorder %s20_s29, 6   ;;  %s1086_s25 = smov %s785_s26 }
 0x1f1   : > { %s1087_s26 = smov %s895_s14  ;;  %s1088_s27 = smov %s793_s28 }
 0x1f2   : > { %s1089_s28 = smov %s1091_s9  ;;  %19 = sbr.rel (!%p17_p10) target bundleno = 4 (0x4), region = 94 }
 0x1f7   :  { %567 = vsyncpa [#allocation4], 1 }
 0x1f8   :  { %569 = vsyncpa [#allocation4 + $0x1], 1 }

</bundles_post_ra>
